<compile_context>
chip_gen: v7x
topology: tpu7x:2x2x1
jax: 0.10.0
libtpu: 0.0.40
codegen_flags: <defaults>
</compile_context>

<pallas_src>
import functools
from typing import List, Optional

import jax
import jax.numpy as jnp
from jax.experimental import pallas as pl
from jax.experimental.pallas import tpu as pltpu
import numpy as np

LANE = 128
SUBLANE = 8


def _round_up(n: int, m: int) -> int:
    return ((n + m - 1) // m) * m


# ----------------------------------------------------------------------------
# Static index machinery (mirrors DynSynLayer.__init__ bookkeeping)
# ----------------------------------------------------------------------------
def build_dynsyn_tables(muscle_groups: List[List[int]], dtype=jnp.float32):
    muscle_dims = max(max(g) for g in muscle_groups) + 1
    num_groups = len(muscle_groups)

    # weight_muscle_indx: every muscle except the first of each (multi-muscle) group
    weight_muscle_indx = []
    for g in muscle_groups:
        if len(g) > 1:
            weight_muscle_indx.extend(g[1:])
    n_weights = muscle_dims - num_groups
    assert len(weight_muscle_indx) == n_weights

    # Lane-dense widths for the *in-kernel* intermediates only; the HBM output
    # keeps its true width (muscle_dims).
    m_pad = _round_up(muscle_dims, LANE)
    w_pad = _round_up(max(n_weights, 1), LANE)

    # Gather matrix G: (num_groups, m_pad), G[g, m] = 1 iff m in groups[g]
    # (== repeat_interleave(muscle_group_dims) followed by the muscle_indx perm)
    G = np.zeros((num_groups, m_pad), dtype=np.float32)
    for gi, g in enumerate(muscle_groups):
        for m in g:
            G[gi, m] = 1.0
    # Every muscle index must belong to exactly one group, otherwise x @ G would
    # SUM contributions where the reference gather selects exactly one.
    col_sums = G[:, :muscle_dims].sum(axis=0)
    assert np.all(col_sums == 1.0), "muscle_groups must partition [0, muscle_dims)"

    # Scatter matrix S: (w_pad, m_pad), S[k, weight_muscle_indx[k]] = 1.
    # Padded rows/cols are zero so padded weight lanes contribute nothing.
    S = np.zeros((w_pad, m_pad), dtype=np.float32)
    for k, m in enumerate(weight_muscle_indx):
        S[k, m] = 1.0

    # One-hot matrices are exact in bf16.
    return (jnp.asarray(G, dtype=dtype), jnp.asarray(S, dtype=dtype),
            muscle_dims, num_groups, n_weights, m_pad, w_pad)


def prepare_mu_params(wmu: jnp.ndarray, bmu: jnp.ndarray, w_pad: int,
                      dtype=jnp.float32):
    """Zero-pad nn.Linear params to w_pad lanes. Bias stays f32 (added post-acc)."""
    d, w = wmu.shape
    wmu_p = jnp.pad(wmu.astype(dtype), ((0, 0), (0, w_pad - w)))
    bmu_p = jnp.pad(bmu.reshape(1, w).astype(jnp.float32),
                    ((0, 0), (0, w_pad - w)))
    return wmu_p, bmu_p  # (d, w_pad), (1, w_pad)


# ----------------------------------------------------------------------------
# Pallas kernels
# ----------------------------------------------------------------------------
def _dynsyn_kernel_amp(x_ref, lat_ref, wmu_ref, bmu_ref, smat_ref, gmat_ref,
                       o_ref, *, amp: float, muscle_dims: int):
    # mu(latent_pi) = latent_pi @ W + b   (f32 accumulation on the MXU)
    mean_w = jnp.dot(lat_ref[...], wmu_ref[...],
                     preferred_element_type=jnp.float32) + bmu_ref[...]

    # SquashedDiagGaussian deterministic action == tanh(mean)   (EUP slot)
    # TODO(synk): stochastic (deterministic=False) sampling path not implemented.
    w = jnp.clip(jnp.tanh(mean_w) * 0.1, -amp, amp)

    # Scatter onto the lane-dense muscle vector. The "+1" of weighted muscles
    # and the implicit 1.0 on unweighted muscles collapse into a single +1.
    full_w = jnp.dot(w.astype(smat_ref.dtype), smat_ref[...],
                     preferred_element_type=jnp.float32) + 1.0

    # repeat_replace_x(x): one-hot gather -> each muscle gets its group's value.
    x_exp = jnp.dot(x_ref[...], gmat_ref[...],
                    preferred_element_type=jnp.float32)

    res = jnp.clip(x_exp * full_w, -1.0, 1.0)
    # Store only the real muscle lanes: masked vst costs nothing per vreg row,
    # and HBM writeback shrinks from m_pad to muscle_dims columns.
    o_ref[...] = res[:, :muscle_dims].astype(o_ref.dtype)


def _dynsyn_kernel_noamp(x_ref, gmat_ref, o_ref, *, muscle_dims: int):
    # dynsyn_weight_amp is None -> weight vector is identically 1: gather+clamp.
    res = jnp.clip(jnp.dot(x_ref[...], gmat_ref[...],
                           preferred_element_type=jnp.float32), -1.0, 1.0)
    o_ref[...] = res[:, :muscle_dims].astype(o_ref.dtype)


# ----------------------------------------------------------------------------
# Wrapper: batch grid (ragged edge handled by Pallas), resident constants,
# true-width output, no wrapper-side HBM copies.
# ----------------------------------------------------------------------------
def _choose_tb(b: int, block_b: Optional[int] = None) -> int:
    """Rows per grid step; multiple of 8 unless it covers the whole batch."""
    if block_b is None:
        if b <= 16:
            return b                              # single full-extent block
        # >=2 grid steps so v7x's 2nd TensorCore gets work; <=2048 rows/step
        # (per-row VMEM cost ~2 KiB x 2 buffers -> far below any VMEM limit).
        n_steps = max(2, -(-b // 2048))
        block_b = -(-b // n_steps)
    if block_b >= b:
        return b
    return _round_up(block_b, SUBLANE)


def dynsyn_forward(x, latent_pi, wmu_p, bmu_p, gmat, smat, muscle_dims: int,
                   amp: Optional[float], *, block_b: Optional[int] = None):
    b, n_groups = x.shape
    m_pad = gmat.shape[1]
    w_pad = smat.shape[0]

    tb = _choose_tb(b, block_b)
    grid = (pl.cdiv(b, tb),)          # ragged last block -> Pallas edge masking

    out_dtype = x.dtype
    out_shape = jax.ShapeDtypeStruct((b, muscle_dims), out_dtype)
    out_spec = pl.BlockSpec((tb, muscle_dims), lambda i: (i, 0))
    x_spec = pl.BlockSpec((tb, n_groups), lambda i: (i, 0))
    const_spec = lambda arr: pl.BlockSpec(arr.shape, lambda i: (0, 0))
    cparams = pltpu.CompilerParams(dimension_semantics=("parallel",))

    nbytes = lambda a: int(a.size) * a.dtype.itemsize
    out_bytes = b * muscle_dims * jnp.dtype(out_dtype).itemsize

    if amp is None:
        cost = pl.CostEstimate(
            flops=2 * b * n_groups * m_pad + 2 * b * m_pad,
            transcendentals=0,
            bytes_accessed=nbytes(x) + nbytes(gmat) + out_bytes)
        return pl.pallas_call(
            functools.partial(_dynsyn_kernel_noamp, muscle_dims=muscle_dims),
            out_shape=out_shape,
            grid=grid,
            in_specs=[x_spec, const_spec(gmat)],
            out_specs=out_spec,
            compiler_params=cparams,
            cost_estimate=cost,
        )(x, gmat)

    d = latent_pi.shape[1]
    cost = pl.CostEstimate(
        flops=2 * b * (d * w_pad + w_pad * m_pad + n_groups * m_pad) + 6 * b * m_pad,
        transcendentals=b * w_pad,
        bytes_accessed=(nbytes(x) + nbytes(latent_pi) + nbytes(wmu_p)
                        + nbytes(bmu_p) + nbytes(smat) + nbytes(gmat) + out_bytes))
    return pl.pallas_call(
        functools.partial(_dynsyn_kernel_amp, amp=float(amp),
                          muscle_dims=muscle_dims),
        out_shape=out_shape,
        grid=grid,
        in_specs=[x_spec,
                  pl.BlockSpec((tb, d), lambda i: (i, 0)),
                  const_spec(wmu_p),
                  const_spec(bmu_p),
                  const_spec(smat),
                  const_spec(gmat)],
        out_specs=out_spec,
        compiler_params=cparams,
        cost_estimate=cost,
    )(x, latent_pi, wmu_p, bmu_p, smat, gmat)


# ----------------------------------------------------------------------------
# Pure-JAX reference (mirrors the PyTorch code literally, for verification)
# ----------------------------------------------------------------------------
def dynsyn_reference(x, latent_pi, wmu, bmu, muscle_groups, amp):
    mean_w = latent_pi @ wmu + bmu
    weight = jnp.tanh(mean_w)
    if amp is None:
        weight = jnp.ones_like(weight)
    else:
        weight = jnp.clip(weight * 0.1, -amp, amp) + 1.0

    group_dims = np.array([len(g) for g in muscle_groups])
    muscle_dims = max(max(g) for g in muscle_groups) + 1
    muscle_indx = list(range(muscle_dims))
    total = 0
    for g in muscle_groups:
        for m in g:
            muscle_indx[m] = total
            total += 1
    weight_muscle_indx = []
    for g in muscle_groups:
        if len(g) > 1:
            weight_muscle_indx.extend(g[1:])

    xr = jnp.repeat(x, jnp.asarray(group_dims), axis=-1,
                    total_repeat_length=muscle_dims)
    xr = xr[..., jnp.asarray(muscle_indx)]
    xr = xr.at[..., jnp.asarray(weight_muscle_indx)].multiply(weight)
    return jnp.clip(xr, -1.0, 1.0)


# ----------------------------------------------------------------------------
if __name__ == "__main__":
    muscle_groups = [[0, 1, 2], [3, 4], [5], [6, 7, 8, 9]]
    last_layer_dim = 32
    dynsyn_weight_amp = 0.5

    key = jax.random.PRNGKey(0)
    k1, k2 = jax.random.split(key, 2)

    # f32 tables/params (exact path) and bf16 copies (halved HBM-traffic path).
    Gmat32, Smat32, M, Gn, W, m_pad, w_pad = build_dynsyn_tables(
        muscle_groups, jnp.float32)
    Gmat16, Smat16, *_ = build_dynsyn_tables(muscle_groups, jnp.bfloat16)

    # nn.Linear(last_layer_dim, muscle_dims - num_groups) params
    wmu = jax.random.normal(k1, (last_layer_dim, W), jnp.float32) * 0.1
    bmu = jax.random.normal(k2, (1, W), jnp.float32) * 0.1
    wmu32_p, bmu_p = prepare_mu_params(wmu, bmu, w_pad, jnp.float32)
    wmu16_p, _ = prepare_mu_params(wmu, bmu, w_pad, jnp.bfloat16)

    # (batch, block_b): tiny single block; forced ragged 3-step grid (40 % 16 != 0
    # exercises edge-block write masking); auto tiling (>=2 parallel steps).
    configs = [(4, None), (40, 16), (40, None)]
    for batch, block_b in configs:
        kx, kl = jax.random.split(jax.random.fold_in(key, batch))
        x = jax.random.uniform(kx, (batch, Gn), jnp.float32, -1.5, 1.5)
        latent_pi = jax.random.normal(kl, (batch, last_layer_dim), jnp.float32)

        for amp in (dynsyn_weight_amp, None):
            ref = dynsyn_reference(x, latent_pi, wmu, bmu, muscle_groups, amp)

            # f32 path: exact against the reference.
            out32 = dynsyn_forward(x, latent_pi, wmu32_p, bmu_p, Gmat32, Smat32,
                                   M, amp, block_b=block_b)
            out32 = jax.block_until_ready(out32)
            np.testing.assert_allclose(np.asarray(out32), np.asarray(ref),
                                       rtol=1e-5, atol=1e-5)

            # bf16 input/output path: halves HBM bytes; looser tolerance.
            out16 = dynsyn_forward(x.astype(jnp.bfloat16),
                                   latent_pi.astype(jnp.bfloat16),
                                   wmu16_p, bmu_p, Gmat16, Smat16,
                                   M, amp, block_b=block_b)
            out16 = jax.block_until_ready(out16)
            np.testing.assert_allclose(np.asarray(out16.astype(jnp.float32)),
                                       np.asarray(ref), rtol=0.0, atol=3e-2)

    print("KERNEL_OK")
</pallas_src>

<mosaic_0001>
module attributes {stable_mosaic.version = 11 : i64} {
  func.func @_dynsyn_kernel_amp(%arg0: i32, %arg1: memref<4x4xf32, #tpu.memory_space<vmem>>, %arg2: memref<4x32xf32, #tpu.memory_space<vmem>>, %arg3: memref<32x128xf32, #tpu.memory_space<vmem>>, %arg4: memref<1x128xf32, #tpu.memory_space<vmem>>, %arg5: memref<128x128xf32, #tpu.memory_space<vmem>>, %arg6: memref<4x128xf32, #tpu.memory_space<vmem>>, %arg7: memref<4x10xf32, #tpu.memory_space<vmem>>) attributes {dimension_semantics = [#tpu.dimension_semantics<parallel>], iteration_bounds = array<i64: 1>, scalar_prefetch = 0 : i64, scratch_operands = 0 : i64, tpu.core_type = #tpu.core_type<tc>, window_params = [{transform_indices = @transform_0, window_bounds = array<i64: 4, 4>}, {transform_indices = @transform_1, window_bounds = array<i64: 4, 32>}, {pipeline_mode = #tpu.pipeline_mode<synchronous>, transform_indices = @transform_2, window_bounds = array<i64: 32, 128>}, {pipeline_mode = #tpu.pipeline_mode<synchronous>, transform_indices = @transform_3, window_bounds = array<i64: 1, 128>}, {pipeline_mode = #tpu.pipeline_mode<synchronous>, transform_indices = @transform_4, window_bounds = array<i64: 128, 128>}, {pipeline_mode = #tpu.pipeline_mode<synchronous>, transform_indices = @transform_5, window_bounds = array<i64: 4, 128>}, {transform_indices = @transform_6, window_bounds = array<i64: 4, 10>}]} {
    %c0 = arith.constant 0 : index
    %c0_0 = arith.constant 0 : index
    %0 = vector.load %arg2[%c0, %c0_0] : memref<4x32xf32, #tpu.memory_space<vmem>>, vector<4x32xf32>
    %c0_1 = arith.constant 0 : index
    %c0_2 = arith.constant 0 : index
    %1 = vector.load %arg3[%c0_1, %c0_2] : memref<32x128xf32, #tpu.memory_space<vmem>>, vector<32x128xf32>
    %cst = arith.constant dense<0.000000e+00> : vector<4x128xf32>
    %2 = tpu.matmul %0, %1, %cst {dimension_numbers = #tpu.dot_dimension_numbers<[1], [0], [0], [1], [0, 0, 1, 1], [], []>} : vector<4x32xf32>, vector<32x128xf32>, vector<4x128xf32> -> vector<4x128xf32>
    %c0_3 = arith.constant 0 : index
    %c0_4 = arith.constant 0 : index
    %3 = vector.load %arg4[%c0_3, %c0_4] : memref<1x128xf32, #tpu.memory_space<vmem>>, vector<1x128xf32>
    %4 = vector.broadcast %3 : vector<1x128xf32> to vector<4x128xf32>
    %5 = arith.addf %2, %4 : vector<4x128xf32>
    %6 = math.tanh %5 : vector<4x128xf32>
    %cst_5 = arith.constant 1.000000e-01 : f32
    %7 = vector.broadcast %cst_5 : f32 to vector<4x128xf32>
    %8 = arith.mulf %6, %7 : vector<4x128xf32>
    %cst_6 = arith.constant -5.000000e-01 : f32
    %cst_7 = arith.constant 5.000000e-01 : f32
    %9 = vector.broadcast %cst_6 : f32 to vector<4x128xf32>
    %10 = arith.maximumf %9, %8 : vector<4x128xf32>
    %11 = vector.broadcast %cst_7 : f32 to vector<4x128xf32>
    %12 = arith.minimumf %11, %10 : vector<4x128xf32>
    %c0_8 = arith.constant 0 : index
    %c0_9 = arith.constant 0 : index
    %13 = vector.load %arg5[%c0_8, %c0_9] : memref<128x128xf32, #tpu.memory_space<vmem>>, vector<128x128xf32>
    %cst_10 = arith.constant dense<0.000000e+00> : vector<4x128xf32>
    %14 = tpu.matmul %12, %13, %cst_10 {dimension_numbers = #tpu.dot_dimension_numbers<[1], [0], [0], [1], [0, 0, 1, 1], [], []>} : vector<4x128xf32>, vector<128x128xf32>, vector<4x128xf32> -> vector<4x128xf32>
    %cst_11 = arith.constant 1.000000e+00 : f32
    %15 = vector.broadcast %cst_11 : f32 to vector<4x128xf32>
    %16 = arith.addf %14, %15 : vector<4x128xf32>
    %c0_12 = arith.constant 0 : index
    %c0_13 = arith.constant 0 : index
    %17 = vector.load %arg1[%c0_12, %c0_13] : memref<4x4xf32, #tpu.memory_space<vmem>>, vector<4x4xf32>
    %c0_14 = arith.constant 0 : index
    %c0_15 = arith.constant 0 : index
    %18 = vector.load %arg6[%c0_14, %c0_15] : memref<4x128xf32, #tpu.memory_space<vmem>>, vector<4x128xf32>
    %cst_16 = arith.constant dense<0.000000e+00> : vector<4x128xf32>
    %19 = tpu.matmul %17, %18, %cst_16 {dimension_numbers = #tpu.dot_dimension_numbers<[1], [0], [0], [1], [0, 0, 1, 1], [], []>} : vector<4x4xf32>, vector<4x128xf32>, vector<4x128xf32> -> vector<4x128xf32>
    %20 = arith.mulf %19, %16 : vector<4x128xf32>
    %cst_17 = arith.constant -1.000000e+00 : f32
    %cst_18 = arith.constant 1.000000e+00 : f32
    %21 = vector.broadcast %cst_17 : f32 to vector<4x128xf32>
    %22 = arith.maximumf %21, %20 : vector<4x128xf32>
    %23 = vector.broadcast %cst_18 : f32 to vector<4x128xf32>
    %24 = arith.minimumf %23, %22 : vector<4x128xf32>
    %25 = vector.extract_strided_slice %24 {offsets = [0, 0], sizes = [4, 10], strides = [1, 1]} : vector<4x128xf32> to vector<4x10xf32>
    %c0_19 = arith.constant 0 : index
    %c0_20 = arith.constant 0 : index
    %26 = vector.load %arg7[%c0_19, %c0_20] : memref<4x10xf32, #tpu.memory_space<vmem>>, vector<4x10xf32>
    tpu.vector_store %arg7[%c0_19, %c0_20], %25 {strides = array<i32>} : memref<4x10xf32, #tpu.memory_space<vmem>>, vector<4x10xf32>,
    return
  }
  func.func @transform_0(%arg0: i32) -> (i32, i32) {
    %c0_i32 = arith.constant 0 : i32
    %c0_i32_0 = arith.constant 0 : i32
    return %arg0, %c0_i32 : i32, i32
  }
  func.func @transform_1(%arg0: i32) -> (i32, i32) {
    %c0_i32 = arith.constant 0 : i32
    %c0_i32_0 = arith.constant 0 : i32
    return %arg0, %c0_i32 : i32, i32
  }
  func.func @transform_2(%arg0: i32) -> (i32, i32) {
    %c0_i32 = arith.constant 0 : i32
    %c0_i32_0 = arith.constant 0 : i32
    %c0_i32_1 = arith.constant 0 : i32
    return %c0_i32, %c0_i32_0 : i32, i32
  }
  func.func @transform_3(%arg0: i32) -> (i32, i32) {
    %c0_i32 = arith.constant 0 : i32
    %c0_i32_0 = arith.constant 0 : i32
    %c0_i32_1 = arith.constant 0 : i32
    return %c0_i32, %c0_i32_0 : i32, i32
  }
  func.func @transform_4(%arg0: i32) -> (i32, i32) {
    %c0_i32 = arith.constant 0 : i32
    %c0_i32_0 = arith.constant 0 : i32
    %c0_i32_1 = arith.constant 0 : i32
    return %c0_i32, %c0_i32_0 : i32, i32
  }
  func.func @transform_5(%arg0: i32) -> (i32, i32) {
    %c0_i32 = arith.constant 0 : i32
    %c0_i32_0 = arith.constant 0 : i32
    %c0_i32_1 = arith.constant 0 : i32
    return %c0_i32, %c0_i32_0 : i32, i32
  }
  func.func @transform_6(%arg0: i32) -> (i32, i32) {
    %c0_i32 = arith.constant 0 : i32
    %c0_i32_0 = arith.constant 0 : i32
    return %arg0, %c0_i32 : i32, i32
  }
}

</mosaic_0001>

<bundles_post_ra>
// kernel: tpu_custom_call.1
= control target key start
LH: loop header
LB: loop body
LE: loop exit
PB: predicated region body
PF: predicated region fallthrough
CT: control target
= control target key end

     0   :  { %11 = vsyncpa [#allocation3], 0  ;;  %s708_s0 = inlined_call_operand.hbm [shape: f32[4,4], index: 0, kind: input, shape index: {}]   ;;  %s709_s1 = inlined_call_operand.hbm [shape: f32[4,32], index: 1, kind: input, shape index: {}]   ;;  %s710_s2 = inlined_call_operand.hbm [shape: f32[32,128], index: 2, kind: input, shape index: {}]   ;;  %s711_s3 = inlined_call_operand.vmem [shape: f32[1,128], index: 3, kind: input, shape index: {}]   ;;  %s712_s4 = inlined_call_operand.hbm [shape: f32[128,128], index: 4, kind: input, shape index: {}]   ;;  %s713_s5 = inlined_call_operand.vmem [shape: f32[4,128], index: 5, kind: input, shape index: {}]   ;;  %s714_s6 = inlined_call_operand.hbm [shape: f32[4,10], index: 6, kind: output, shape index: {}]  }
   0x1   :  { %12 = vsyncpa [#allocation6], 0 }
   0x2   :  { %13 = vsyncpa [#allocation9], 0 }
   0x3   :  { %14 = vsyncpa [#allocation4], 0  ;;  %s594_s21 = smov [#allocation5]   ;;  %s595_s23 = smov [#allocation2]  }
   0x4   :  { %s31_s22 = sshll.u32 %s594_s21, 4  ;;  %s21_s24 = sshll.u32 %s595_s23, 4  ;;  %s32_s22 = int_to_ptr.vmem [resolvable:$true] %s31_s22  ;;  %s22_s24 = int_to_ptr.vmem [resolvable:$true] %s21_s24 }
   0x5   :  { %s476_s27 = scalar_lea.hbm %s709_s1, 64 }
   0x6   :  { %p477_p0 = scmp.ne.s32.totalorder %s709_s1, %s476_s27  ;;  %p480_p1 = scmp.lt.u32.totalorder %s476_s27, %s709_s1 }
   0x8   :  { %p482_p2 = pnand %p480_p1, %p477_p0 }
   0xa   :  { %485 = shalt.err (!%p482_p2)
}
   0xb   :  { %s486_s8 = scalar_lea.vmem %s32_s22, 64  ;;  %p491_p4 = scmp.lt.s32.totalorder %s32_s22, %s32_s22 }
   0xc   :  { %p487_p3 = scmp.ne.s32.totalorder %s32_s22, %s486_s8  ;;  %p492_p5 = scmp.lt.s32.totalorder %s486_s8, %s486_s8 }
   0xe   :  { %p493_p6 = por %p492_p5, %p491_p4 }
  0x10   :  { %p494_p7 = pnand %p493_p6, %p487_p3 }
  0x12   :  { %497 = shalt.err (!%p494_p7)
}
  0x13   :  { %34 = dma.hbm_to_vmem [thread:$0]  %s709_s1, 64, %s32_s22, [#allocation6]  }
  0x14   :  { %s498_s13 = scalar_lea.hbm %s708_s0, 64 }
  0x15   :  { %p499_p8 = scmp.ne.s32.totalorder %s708_s0, %s498_s13  ;;  %p502_p9 = scmp.lt.u32.totalorder %s498_s13, %s708_s0 }
  0x17   :  { %p504_p10 = pnand %p502_p9, %p499_p8 }
  0x19   :  { %507 = shalt.err (!%p504_p10)
}
  0x1a   :  { %s508_s18 = scalar_lea.vmem %s22_s24, 64  ;;  %p513_p12 = scmp.lt.s32.totalorder %s22_s24, %s22_s24 }
  0x1b   :  { %p509_p11 = scmp.ne.s32.totalorder %s22_s24, %s508_s18  ;;  %p514_p13 = scmp.lt.s32.totalorder %s508_s18, %s508_s18 }
  0x1d   :  { %p515_p0 = por %p514_p13, %p513_p12 }
  0x1f   :  { %p516_p1 = pnand %p515_p0, %p509_p11 }
  0x21   :  { %519 = shalt.err (!%p516_p1)
}
  0x22   :  { %24 = dma.hbm_to_vmem [thread:$0]  %s708_s0, 64, %s22_s24, [#allocation3]  }
  0x23   :  { %s596_s20 = smov [#allocation7]   ;;  %s520_s25 = scalar_lea.hbm %s710_s2, 512 }
  0x24   :  { %s40_s21 = sshll.u32 %s596_s20, 4  ;;  %p521_p2 = scmp.ne.s32.totalorder %s710_s2, %s520_s25  ;;  %s41_s21 = int_to_ptr.vmem [resolvable:$true] %s40_s21 }
  0x25   :  { %p524_p3 = scmp.lt.u32.totalorder %s520_s25, %s710_s2 }
  0x27   :  { %p526_p4 = pnand %p524_p3, %p521_p2 }
  0x29   :  { %529 = shalt.err (!%p526_p4)
}
  0x2a   :  { %s530_s30 = scalar_lea.vmem %s41_s21, 512  ;;  %p535_p6 = scmp.lt.s32.totalorder %s41_s21, %s41_s21 }
  0x2b   :  { %p531_p5 = scmp.ne.s32.totalorder %s41_s21, %s530_s30  ;;  %p536_p7 = scmp.lt.s32.totalorder %s530_s30, %s530_s30 }
  0x2d   :  { %p537_p8 = por %p536_p7, %p535_p6 }
  0x2f   :  { %p538_p9 = pnand %p537_p8, %p531_p5 }
  0x31   :  { %541 = shalt.err (!%p538_p9)
}
  0x32   :  { %s597_s0 = smov 128   ;;  %s598_s24 = smov 8  }
  0x33   :  { %46 = dma.hbm_to_vmem [thread:$0]  %s710_s2, 512, %s41_s21, [#allocation6], %s597_s0, %s597_s0, %s598_s24  }
  0x34   :  { %s599_s9 = smov [#allocation8]   ;;  %s542_s13 = scalar_lea.hbm %s712_s4, 2048 }
  0x35   :  { %s54_s10 = sshll.u32 %s599_s9, 4  ;;  %p543_p10 = scmp.ne.s32.totalorder %s712_s4, %s542_s13  ;;  %s55_s10 = int_to_ptr.vmem [resolvable:$true] %s54_s10 }
  0x36   :  { %p546_p11 = scmp.lt.u32.totalorder %s542_s13, %s712_s4 }
  0x38   :  { %p548_p12 = pnand %p546_p11, %p543_p10 }
  0x3a   :  { %551 = shalt.err (!%p548_p12)
}
  0x3b   :  { %s552_s18 = scalar_lea.vmem %s55_s10, 2048  ;;  %p557_p0 = scmp.lt.s32.totalorder %s55_s10, %s55_s10 }
  0x3c   :  { %p553_p13 = scmp.ne.s32.totalorder %s55_s10, %s552_s18  ;;  %p558_p1 = scmp.lt.s32.totalorder %s552_s18, %s552_s18 }
  0x3e   :  { %p559_p2 = por %p558_p1, %p557_p0 }
  0x40   :  { %p560_p3 = pnand %p559_p2, %p553_p13 }
  0x42   :  { %563 = shalt.err (!%p560_p3)
}
  0x43   :  { %60 = dma.hbm_to_vmem [thread:$0]  %s712_s4, 2048, %s55_s10, [#allocation9], %s597_s0, %s597_s0, %s598_s24  }
  0x44   :  { %586 = dma.done.wait [#allocation3], 64  }
  0x45   :  { %587 = vsyncadd [#allocation3], 4294967232 }
  0x46   :  { %588 = dma.done.wait [#allocation6], 576  }
  0x47   :  { %589 = vsyncadd [#allocation6], 4294966720 }
  0x48   :  { %590 = dma.done.wait [#allocation9], 2048  }
  0x49   :  { %591 = vsyncadd [#allocation9], 4294965248  ;;  %v600_v0 = vmov 0.0|0.0   ;;  %vm601_vm0 = vmmov 0   ;;  %v602_v1 = vmov 0.0   ;;  %v76_v2 = vld [vmem:[#allocation7] sm:$0xff] }
  0x4a   :  { %434 = vmatprep.subr.bf16.mxu0 %v600_v0  ;;  %391 = vmatprep.mubr.msk.f32.mxu0 %vm601_vm0, %v602_v1  ;;  %v77_v3 = vld [vmem:[#allocation7 + $0x8] sm:$0xff]  ;;  %v78_v4 = vld [vmem:[#allocation7 + $0x10] sm:$0xff]  ;;  %v79_v6 = vld [vmem:[#allocation7 + $0x18] sm:$0xff]  ;;  %vm87_vm1 = vcmask 261120   ;;  %vm257_vm2 = vcmask 1043456   ;;  %vm253_vm3 = vcmask 31744  }
  0x4b   :  { %440 = vmatprep.subr.bf16.mxu1 %v600_v0  ;;  %426 = vmatprep.mubr.msk.f32.mxu1 %vm601_vm0, %v602_v1  ;;  %v435_v5 = vpack.c.bf16 %v77_v3, %v76_v2  ;;  %v165_v7 = vld [vmem:[#allocation8] sm:$0xff]  ;;  %v166_v8 = vld [vmem:[#allocation8 + $0x8] sm:$0xff]  ;;  %v167_v9 = vld [vmem:[#allocation8 + $0x10] sm:$0xff]  ;;  %v438_v11 = vpack.c.bf16 %v79_v6, %v78_v4  ;;  %vm334_vm4 = vcmask 76800  }
  0x4c   :  { %v168_v10 = vld [vmem:[#allocation8 + $0x18] sm:$0xff]  ;;  %v441_v12 = vpack.c.bf16 %v166_v8, %v165_v7  ;;  %v169_v14 = vld [vmem:[#allocation8 + $0x20] sm:$0xff]  ;;  %v170_v15 = vld [vmem:[#allocation8 + $0x28] sm:$0xff] }
  0x4d   :  { %436 = vmatpush3.bf16.msra.mxu0 %v435_v5  ;;  %v444_v13 = vpack.c.bf16 %v168_v10, %v167_v9  ;;  %v75_v16 = vld [vmem:[#allocation5] sm:$0xf]  ;;  %v447_v17 = vpack.c.bf16 %v170_v15, %v169_v14  ;;  %v171_v18 = vld [vmem:[#allocation8 + $0x30] sm:$0xff]  ;;  %v173_v21 = vld [vmem:[#allocation8 + $0x40] sm:$0xff] }
  0x4e   :  { %437 = vmatprep.subr.bf16.mxu0 %v600_v0  ;;  %442 = vmatpush3.bf16.msra.mxu1 %v441_v12  ;;  %v172_v19 = vld [vmem:[#allocation8 + $0x38] sm:$0xff]  ;;  %v174_v22 = vld [vmem:[#allocation8 + $0x48] sm:$0xff]  ;;  %v175_v24 = vld [vmem:[#allocation8 + $0x50] sm:$0xff] }
  0x4f   :  { %443 = vmatprep.subr.bf16.mxu1 %v600_v0  ;;  %v450_v20 = vpack.c.bf16 %v172_v19, %v171_v18  ;;  %v453_v23 = vpack.c.bf16 %v174_v22, %v173_v21  ;;  %v176_v25 = vld [vmem:[#allocation8 + $0x58] sm:$0xff]  ;;  %v177_v27 = vld [vmem:[#allocation8 + $0x60] sm:$0xff]  ;;  %v178_v28 = vld [vmem:[#allocation8 + $0x68] sm:$0xff] }
  0x50   :  { %v456_v26 = vpack.c.bf16 %v176_v25, %v175_v24  ;;  %v459_v29 = vpack.c.bf16 %v178_v28, %v177_v27  ;;  %v179_v30 = vld [vmem:[#allocation8 + $0x70] sm:$0xff]  ;;  %v180_v31 = vld [vmem:[#allocation8 + $0x78] sm:$0xff] }
  0x51   :  { %439 = vmatpush3.bf16.msra.mxu0 %v438_v11  ;;  %v462_v32 = vpack.c.bf16 %v180_v31, %v179_v30  ;;  %v252_v33 = vld [vmem:[%s713_s5] sm:$0xf]  ;;  %s603_s5 = smov [#allocation10]  }
  0x52   :  { %429 = vmatprep.subr.mxu0 %v602_v1  ;;  %445 = vmatpush3.bf16.msra.mxu1 %v444_v13  ;;  %v251_v34 = vld [vmem:[#allocation2] sm:$0xf]  ;;  %s342_s22 = sshll.u32 %s603_s5, 4  ;;  %s343_s22 = int_to_ptr.vmem [resolvable:$true] %s342_s22 }
  0x53   :  { %446 = vmatprep.subr.bf16.mxu1 %v600_v0  ;;  %v353_v35 = vld [vmem:[%s711_s3] ss:$0 sm:$0xff]  ;;  %s564_s3 = scalar_lea.vmem %s343_s22, 64  ;;  %p569_p5 = scmp.lt.s32.totalorder %s343_s22, %s343_s22 }
  0x54   :  { %392 = vmatmul.mubr.msk.f32.vlgmr.msra.gmra.mrb[0].mxu0 %vm87_vm1, %v75_v16  ;;  %p565_p4 = scmp.ne.s32.totalorder %s343_s22, %s564_s3  ;;  %p570_p6 = scmp.lt.s32.totalorder %s564_s3, %s564_s3 }
  0x55   :  { %431 = vmatprep.mubr.msk.f32.mxu0 %vm601_vm0, %v602_v1  ;;  %430 = vmatpush3.msk.msra.mxu0 %vm257_vm2, %v252_v33 }
  0x56   :  { %448 = vmatpush3.bf16.msra.mxu1 %v447_v17  ;;  %p571_p7 = por %p570_p6, %p569_p5 }
  0x57   :  { %449 = vmatprep.subr.bf16.mxu1 %v600_v0 }
  0x58   :  { %432 = vmatmul.mubr.msk.f32.vlgmr.msra.gmra.mrb[2].mxu0 %vm253_vm3, %v251_v34  ;;  %p572_p8 = pnand %p571_p7, %p565_p4 }
  0x5a   :  { %451 = vmatpush3.bf16.msra.mxu1 %v450_v20 }
  0x5b   :  { %452 = vmatprep.subr.bf16.mxu1 %v600_v0 }
  0x5e   :  { %454 = vmatpush3.bf16.msra.mxu1 %v453_v23 }
  0x5f   :  { %455 = vmatprep.subr.bf16.mxu1 %v600_v0 }
  0x62   :  { %457 = vmatpush3.bf16.msra.mxu1 %v456_v26 }
  0x63   :  { %458 = vmatprep.subr.bf16.mxu1 %v600_v0 }
  0x66   :  { %460 = vmatpush3.bf16.msra.mxu1 %v459_v29 }
  0x67   :  { %461 = vmatprep.subr.bf16.mxu1 %v600_v0 }
  0x6a   :  { %463 = vmatpush3.bf16.msra.mxu1 %v462_v32 }
 0x127   :  { %v157_v36 = vpop.f32.mrb[0].mxu0 }
 0x128   :  { %v158_v37 = vadd.f32 %v353_v35, %v157_v36  ;;  %v393_v38 = vpop.f32.mrb[1].mxu0 }
 0x12a   :  { %474 = vtanh.f32 %v158_v37 }
 0x12b   :  { %v327_v42 = vpop.f32.mrb[2].mxu0 }
 0x12c   :  { %v433_v43 = vpop.f32.mrb[3].mxu0 }
 0x134   :  { %v475_v39 = vpop.eup %474 }
 0x135   :  { %v162_v40 = vmul.f32 0.1, %v475_v39 }
 0x137   :  { %v355_v41 = vclamps-f32 %v162_v40, 0.5 }
 0x139   :  { %427 = vmatmul.mubr.f32.vlgmr.msra.gmra.mrb[0].mxu1 %v355_v41 }
 0x20c   :  { %v247_v44 = vpop.f32.mrb[0].mxu1 }
 0x20d   :  { %v248_v45 = vadd.f32 1.0, %v247_v44  ;;  %v428_v46 = vpop.f32.mrb[1].mxu1 }
 0x20f   :  { %v331_v47 = vmul.f32 %v327_v42, %v248_v45 }
 0x211   :  { %v358_v48 = vclamps-f32 %v331_v47, 1.0 }
 0x213   :  { %335 = vst.msk [vmem:[#allocation10] sm:$0xf] %vm334_vm4, %v358_v48 }
 0x214   :  { %575 = shalt.err (!%p572_p8)
}
 0x215   :  { %s576_s26 = scalar_lea.hbm %s714_s6, 64 }
 0x216   :  { %p577_p9 = scmp.ne.s32.totalorder %s714_s6, %s576_s26  ;;  %p580_p10 = scmp.lt.u32.totalorder %s576_s26, %s714_s6 }
 0x218   :  { %p582_p11 = pnand %p580_p10, %p577_p9 }
 0x21a   :  { %585 = shalt.err (!%p582_p11)
}
 0x21b   :  { %345 = dma.vmem_to_hbm [thread:$0]  %s343_s22, 64, %s714_s6, [#allocation4]  }
 0x21c   :  { %592 = dma.done.wait [#allocation4], 64  }
 0x21d   :  { %593 = vsyncadd [#allocation4], 4294967232 }
 0x21e   :  { %349 = vsyncpa [#allocation3], 1 }
 0x21f   :  { %350 = vsyncpa [#allocation6], 1 }
 0x220   :  { %351 = vsyncpa [#allocation9], 1 }
 0x221   :  { %352 = vsyncpa [#allocation4], 1 }

</bundles_post_ra>
